<compile_context>
chip_gen: v7x
topology: tpu7x:2x2x1
jax: 0.10.0
libtpu: 0.0.40
codegen_flags: <defaults>
</compile_context>

<pallas_src>
import numpy as np

import jax
import jax.numpy as jnp
from jax.experimental import pallas as pl
from jax.experimental.pallas import tpu as pltpu


def _pad(n: int, m: int) -> int:
    return -(-n // m) * m


def _device_vmem_bytes() -> int:
    try:
        return int(pltpu.get_tpu_info().vmem_capacity_bytes)
    except Exception:
        return 64 << 20  # conservative (v7x-sized) fallback


def _make_pool_selector(H: int, W: int, K: int, stride: int):
    """S[h*W + w, oh*OW + ow] = 1/K^2 iff (h, w) lies in output window (oh, ow)."""
    OH = (H - K) // stride + 1
    OW = (W - K) // stride + 1
    h = np.arange(H)[:, None]
    oh = np.arange(OH)[None, :] * stride
    mh = (h >= oh) & (h < oh + K)                       # (H, OH)
    w = np.arange(W)[:, None]
    ow = np.arange(OW)[None, :] * stride
    mw = (w >= ow) & (w < ow + K)                       # (W, OW)
    s = (mh[:, None, :, None] & mw[None, :, None, :]).astype(np.float32)
    s = s.reshape(H * W, OH * OW) * np.float32(1.0 / (K * K))
    return jnp.asarray(s), OH, OW


def _pick_tiling(P: int, HW: int, OHOW: int, itemsize: int = 4):
    """Choose plane-block B, selector column tile TC, grid sizes, vmem limit."""
    cap = _device_vmem_bytes()
    # Double-buffered working-set target: ~1/3 of physical VMEM, capped.
    budget = max(8 << 20, min(cap // 3, 48 << 20))

    # --- selector column tile (lane axis of the output) ---------------------
    def sel_vmem(tc):                                   # double-buffered block
        return 2 * _pad(HW, 8) * _pad(tc, 128) * itemsize

    if sel_vmem(OHOW) <= budget // 2:
        TC = OHOW                                       # whole selector resident
    else:
        TC = 128
        while TC + 128 < OHOW and sel_vmem(TC + 128) <= budget // 2:
            TC += 128
    ncols = pl.cdiv(OHOW, TC)

    # --- plane block size ----------------------------------------------------
    # Per plane: x block (2x buffered) + out block (2x buffered) + f32 result.
    per_plane = (2 * _pad(HW, 128) + 3 * _pad(TC, 128)) * itemsize
    b_vmem = max(1, (budget - sel_vmem(TC)) // per_plane)

    if P <= 8:
        B = P                                           # single aligned block
    else:
        target_steps = 4                                # >= 2 TCs x 2 buffers
        b_par = max(8, _pad(pl.cdiv(P, target_steps), 8)) if P >= 16 else P
        b = max(1, min(b_vmem, b_par, P))
        if b >= P:
            B = P
        else:
            B = max(8, (b // 8) * 8)                    # sublane-aligned block
            if B < P and P % B != 0:
                # Prefer a block that divides P (no ragged final block) as long
                # as it does not shrink the block by more than 2x.
                for cand in range(B, max(8, B // 2) - 1, -8):
                    if P % cand == 0:
                        B = cand
                        break
            B = min(B, P)
    nblocks = pl.cdiv(P, B)

    # --- scoped-VMEM limit for the compiler ----------------------------------
    bp = _pad(B, 8)
    need = (sel_vmem(TC)
            + 2 * bp * _pad(HW, 128) * itemsize         # x block, 2x buffered
            + 2 * bp * _pad(TC, 128) * itemsize         # out block, 2x buffered
            + bp * _pad(TC, 128) * itemsize)            # f32 matmul result
    vmem_limit = int(min(int(cap * 0.85), max(2 * need, 32 << 20)))
    return B, nblocks, TC, ncols, vmem_limit


def _counter_kernel(sel_ref, x_ref, o_ref):
    # One MXU matmul performs the full (H- and W-axis) average pool for B
    # planes; one lane-dense store writes the whole output block.
    o_ref[...] = jnp.dot(
        x_ref[...], sel_ref[...], preferred_element_type=jnp.float32
    ).astype(o_ref.dtype)


def counter_forward(x: jax.Array, kernel_size: int, stride: int) -> jax.Array:
    """Equivalent of Counter(channels, kernel_size, stride).forward(x); x is NCHW."""
    N, C, H, W = x.shape
    K = kernel_size
    sel, OH, OW = _make_pool_selector(H, W, K, stride)
    P, HW, OHOW = N * C, H * W, OH * OW

    B, nblocks, TC, ncols, vmem_limit = _pick_tiling(P, HW, OHOW)

    xf = x.reshape(P, HW)                               # free, contiguous reshape

    out = pl.pallas_call(
        _counter_kernel,
        out_shape=jax.ShapeDtypeStruct((P, OHOW), x.dtype),
        grid_spec=pltpu.PrefetchScalarGridSpec(
            num_scalar_prefetch=0,
            grid=(nblocks, ncols),
            in_specs=[
                # Selector: block index constant along the plane axis (and the
                # whole thing when ncols == 1) -> fetched once, stays resident.
                pl.BlockSpec((HW, TC), lambda i, j: (0, j)),
                # x: plane block i, resident across the inner (column) axis.
                pl.BlockSpec((B, HW), lambda i, j: (i, 0)),
            ],
            out_specs=pl.BlockSpec((B, TC), lambda i, j: (i, j)),
        ),
        compiler_params=pltpu.CompilerParams(
            dimension_semantics=("parallel", "arbitrary"),
            vmem_limit_bytes=vmem_limit,
        ),
    )(sel, xf)
    return out.reshape(N, C, OH, OW)


if __name__ == "__main__":
    key = jax.random.PRNGKey(0)
    N, C, H, W = 2, 4, 16, 16
    kernel_size, stride = 4, 2

    x = jax.random.normal(key, (N, C, H, W), dtype=jnp.float32)

    y = counter_forward(x, kernel_size, stride)
    y = jax.block_until_ready(y)

    # Pure-numpy reference of the PyTorch forward:
    # Conv2d(identity channel mix, all-ones KxK tap) / K^2 == avg pooling.
    xn = np.asarray(x)
    OH = (H - kernel_size) // stride + 1
    OW = (W - kernel_size) // stride + 1
    ref = np.zeros((N, C, OH, OW), np.float32)
    for oh in range(OH):
        for ow in range(OW):
            ref[:, :, oh, ow] = xn[
                :, :,
                oh * stride: oh * stride + kernel_size,
                ow * stride: ow * stride + kernel_size,
            ].mean(axis=(2, 3))
    np.testing.assert_allclose(np.asarray(y), ref, rtol=1e-5, atol=1e-5)

    print("KERNEL_OK")
</pallas_src>

<mosaic_0001>
module attributes {stable_mosaic.version = 11 : i64} {
  func.func @_counter_kernel(%arg0: i32, %arg1: i32, %arg2: memref<256x49xf32, #tpu.memory_space<vmem>>, %arg3: memref<8x256xf32, #tpu.memory_space<vmem>>, %arg4: memref<8x49xf32, #tpu.memory_space<vmem>>) attributes {dimension_semantics = [#tpu.dimension_semantics<parallel>, #tpu.dimension_semantics<arbitrary>], iteration_bounds = array<i64: 1, 1>, scalar_prefetch = 0 : i64, scratch_operands = 0 : i64, tpu.core_type = #tpu.core_type<tc>, window_params = [{transform_indices = @transform_0, window_bounds = array<i64: 256, 49>}, {transform_indices = @transform_1, window_bounds = array<i64: 8, 256>}, {transform_indices = @transform_2, window_bounds = array<i64: 8, 49>}]} {
    %c0 = arith.constant 0 : index
    %c0_0 = arith.constant 0 : index
    %0 = vector.load %arg3[%c0, %c0_0] : memref<8x256xf32, #tpu.memory_space<vmem>>, vector<8x256xf32>
    %c0_1 = arith.constant 0 : index
    %c0_2 = arith.constant 0 : index
    %1 = vector.load %arg2[%c0_1, %c0_2] : memref<256x49xf32, #tpu.memory_space<vmem>>, vector<256x49xf32>
    %cst = arith.constant dense<0.000000e+00> : vector<8x49xf32>
    %2 = tpu.matmul %0, %1, %cst {dimension_numbers = #tpu.dot_dimension_numbers<[1], [0], [0], [1], [0, 0, 1, 1], [], []>} : vector<8x256xf32>, vector<256x49xf32>, vector<8x49xf32> -> vector<8x49xf32>
    %c0_3 = arith.constant 0 : index
    %c0_4 = arith.constant 0 : index
    %3 = vector.load %arg4[%c0_3, %c0_4] : memref<8x49xf32, #tpu.memory_space<vmem>>, vector<8x49xf32>
    tpu.vector_store %arg4[%c0_3, %c0_4], %2 {strides = array<i32>} : memref<8x49xf32, #tpu.memory_space<vmem>>, vector<8x49xf32>,
    return
  }
  func.func @transform_0(%arg0: i32, %arg1: i32) -> (i32, i32) {
    %c0_i32 = arith.constant 0 : i32
    %c0_i32_0 = arith.constant 0 : i32
    return %c0_i32, %arg1 : i32, i32
  }
  func.func @transform_1(%arg0: i32, %arg1: i32) -> (i32, i32) {
    %c0_i32 = arith.constant 0 : i32
    %c0_i32_0 = arith.constant 0 : i32
    return %arg0, %c0_i32 : i32, i32
  }
  func.func @transform_2(%arg0: i32, %arg1: i32) -> (i32, i32) {
    %c0_i32 = arith.constant 0 : i32
    return %arg0, %arg1 : i32, i32
  }
}

</mosaic_0001>

<bundles_post_ra>
// kernel: tpu_custom_call.1
= control target key start
LH: loop header
LB: loop body
LE: loop exit
PB: predicated region body
PF: predicated region fallthrough
CT: control target
= control target key end

     0   :  { %s354_s0 = inlined_call_operand.vmem [shape: f32[256,49], index: 0, kind: input, shape index: {}]   ;;  %s355_s1 = inlined_call_operand.vmem [shape: f32[8,256], index: 1, kind: input, shape index: {}]   ;;  %s356_s2 = inlined_call_operand.hbm [shape: f32[8,49], index: 2, kind: output, shape index: {}]  }
   0x1   :  { %v30_v0 = vld [vmem:[%s354_s0 + $0x80] sm:$0xff]  ;;  %v31_v1 = vld [vmem:[%s354_s0 + $0x88] sm:$0xff]  ;;  %v32_v5 = vld [vmem:[%s354_s0 + $0x90] sm:$0xff] }
   0x2   :  { %v14_v2 = vld [vmem:[%s354_s0] sm:$0xff]  ;;  %v167_v3 = vpack.c.bf16 %v31_v1, %v30_v0  ;;  %v15_v4 = vld [vmem:[%s354_s0 + $0x8] sm:$0xff]  ;;  %v33_v6 = vld [vmem:[%s354_s0 + $0x98] sm:$0xff] }
   0x3   :  { %v169_v7 = vpack.c.bf16 %v15_v4, %v14_v2  ;;  %v171_v8 = vpack.c.bf16 %v33_v6, %v32_v5  ;;  %v16_v9 = vld [vmem:[%s354_s0 + $0x10] sm:$0xff]  ;;  %v17_v10 = vld [vmem:[%s354_s0 + $0x18] sm:$0xff]  ;;  %v34_v11 = vld [vmem:[%s354_s0 + $0xa0] sm:$0xff] }
   0x4   :  { %168 = vmatprep.subr.bf16.mxu0 %v167_v3  ;;  %v35_v12 = vld [vmem:[%s354_s0 + $0xa8] sm:$0xff]  ;;  %v173_v13 = vpack.c.bf16 %v17_v10, %v16_v9  ;;  %v18_v15 = vld [vmem:[%s354_s0 + $0x20] sm:$0xff]  ;;  %v36_v17 = vld [vmem:[%s354_s0 + $0xb0] sm:$0xff] }
   0x5   :  { %170 = vmatpush3.bf16.msra.mxu0 %v169_v7  ;;  %v175_v14 = vpack.c.bf16 %v35_v12, %v34_v11  ;;  %v19_v16 = vld [vmem:[%s354_s0 + $0x28] sm:$0xff]  ;;  %v37_v18 = vld [vmem:[%s354_s0 + $0xb8] sm:$0xff]  ;;  %v20_v21 = vld [vmem:[%s354_s0 + $0x30] sm:$0xff] }
   0x6   :  { %172 = vmatprep.subr.bf16.mxu0 %v171_v8  ;;  %v177_v19 = vpack.c.bf16 %v19_v16, %v18_v15  ;;  %v179_v20 = vpack.c.bf16 %v37_v18, %v36_v17  ;;  %v21_v22 = vld [vmem:[%s354_s0 + $0x38] sm:$0xff]  ;;  %v38_v23 = vld [vmem:[%s354_s0 + $0xc0] sm:$0xff]  ;;  %v39_v24 = vld [vmem:[%s354_s0 + $0xc8] sm:$0xff] }
   0x7   :  { %v13_v25 = vld [vmem:[%s355_s1 + $0x8] sm:$0xff] }
   0x8   :  { %110 = vmatprep.mubr.f32.mxu0 %v13_v25 }
   0x9   :  { %174 = vmatpush3.bf16.msra.mxu0 %v173_v13 }
   0xa   :  { %176 = vmatprep.subr.bf16.mxu0 %v175_v14 }
   0xb   :  { %7 = vsyncpa [#allocation3], 0  ;;  %v181_v26 = vpack.c.bf16 %v21_v22, %v20_v21  ;;  %v183_v27 = vpack.c.bf16 %v39_v24, %v38_v23  ;;  %v22_v28 = vld [vmem:[%s354_s0 + $0x40] sm:$0xff]  ;;  %v23_v29 = vld [vmem:[%s354_s0 + $0x48] sm:$0xff]  ;;  %s224_s21 = smov [#allocation2]   ;;  %vm116_vm0 = vcmask 400384  }
   0xc   :  { %v40_v30 = vld [vmem:[%s354_s0 + $0xd0] sm:$0xff]  ;;  %v41_v31 = vld [vmem:[%s354_s0 + $0xd8] sm:$0xff]  ;;  %v185_v32 = vpack.c.bf16 %v23_v29, %v22_v28  ;;  %v42_v36 = vld [vmem:[%s354_s0 + $0xe0] sm:$0xff]  ;;  %s124_s22 = sshll.u32 %s224_s21, 4  ;;  %s125_s22 = int_to_ptr.vmem [resolvable:$true] %s124_s22 }
   0xd   :  { %178 = vmatpush3.bf16.msra.mxu0 %v177_v19  ;;  %v187_v33 = vpack.c.bf16 %v41_v31, %v40_v30  ;;  %v24_v34 = vld [vmem:[%s354_s0 + $0x50] sm:$0xff]  ;;  %v25_v35 = vld [vmem:[%s354_s0 + $0x58] sm:$0xff]  ;;  %v43_v37 = vld [vmem:[%s354_s0 + $0xe8] sm:$0xff]  ;;  %s200_s23 = scalar_lea.vmem %s125_s22, 128  ;;  %p205_p1 = scmp.lt.s32.totalorder %s125_s22, %s125_s22 }
   0xe   :  { %180 = vmatprep.subr.bf16.mxu0 %v179_v20  ;;  %v189_v38 = vpack.c.bf16 %v25_v35, %v24_v34  ;;  %v191_v39 = vpack.c.bf16 %v43_v37, %v42_v36  ;;  %v26_v40 = vld [vmem:[%s354_s0 + $0x60] sm:$0xff]  ;;  %v27_v41 = vld [vmem:[%s354_s0 + $0x68] sm:$0xff]  ;;  %v44_v42 = vld [vmem:[%s354_s0 + $0xf0] sm:$0xff]  ;;  %p201_p0 = scmp.ne.s32.totalorder %s125_s22, %s200_s23  ;;  %p206_p2 = scmp.lt.s32.totalorder %s200_s23, %s200_s23 }
   0xf   :  { %v45_v43 = vld [vmem:[%s354_s0 + $0xf8] sm:$0xff]  ;;  %v193_v44 = vpack.c.bf16 %v27_v41, %v26_v40  ;;  %v28_v46 = vld [vmem:[%s354_s0 + $0x70] sm:$0xff]  ;;  %v12_v49 = vld [vmem:[%s355_s1] sm:$0xff] }
  0x10   :  { %v195_v45 = vpack.c.bf16 %v45_v43, %v44_v42  ;;  %v29_v47 = vld [vmem:[%s354_s0 + $0x78] sm:$0xff]  ;;  %p207_p3 = por %p206_p2, %p205_p1 }
  0x11   :  { %182 = vmatpush3.bf16.msra.mxu0 %v181_v26  ;;  %v197_v48 = vpack.c.bf16 %v29_v47, %v28_v46 }
  0x12   :  { %184 = vmatprep.subr.bf16.mxu0 %v183_v27  ;;  %p208_p4 = pnand %p207_p3, %p201_p0 }
  0x15   :  { %186 = vmatpush3.bf16.msra.mxu0 %v185_v32 }
  0x16   :  { %188 = vmatprep.subr.bf16.mxu0 %v187_v33 }
  0x19   :  { %190 = vmatpush3.bf16.msra.mxu0 %v189_v38 }
  0x1a   :  { %192 = vmatprep.subr.bf16.mxu0 %v191_v39 }
  0x1d   :  { %194 = vmatpush3.bf16.msra.mxu0 %v193_v44 }
  0x1e   :  { %196 = vmatprep.subr.bf16.mxu0 %v195_v45 }
  0x21   :  { %198 = vmatpush3.bf16.msra.mxu0 %v197_v48 }
  0x24   :  { %111 = vmatmul.mubr.f32.vlgmr.msra.gmra.mrb[0].mxu0 %v12_v49 }
  0xf7   :  { %v164_v50 = vpop.f32.mrb[0].mxu0 }
  0xf8   :  { %v165_v51 = vpop.f32.mrb[1].mxu0 }
  0xf9   :  { %v166_v52 = vadd.f32 %v165_v51, %v164_v50 }
  0xfb   :  { %117 = vst.msk [vmem:[#allocation2] sm:$0xff] %vm116_vm0, %v166_v52 }
  0xfc   :  { %211 = shalt.err (!%p208_p4)
}
  0xfd   :  { %s212_s1 = scalar_lea.hbm %s356_s2, 128 }
  0xfe   :  { %p213_p5 = scmp.ne.s32.totalorder %s356_s2, %s212_s1  ;;  %p216_p6 = scmp.lt.u32.totalorder %s212_s1, %s356_s2 }
 0x100   :  { %p218_p7 = pnand %p216_p6, %p213_p5 }
 0x102   :  { %221 = shalt.err (!%p218_p7)
}
 0x103   :  { %127 = dma.vmem_to_hbm [thread:$0]  %s125_s22, 128, %s356_s2, [#allocation3]  }
 0x104   :  { %222 = dma.done.wait [#allocation3], 128  }
 0x105   :  { %223 = vsyncadd [#allocation3], 4294967168 }
 0x106   :  { %131 = vsyncpa [#allocation3], 1 }

</bundles_post_ra>
